<compile_context>
chip_gen: v6e
topology: v6e:2x2x1
jax: 0.10.0
libtpu: 0.0.40
codegen_flags: <defaults>
</compile_context>

<pallas_src>
import functools

import jax
import jax.numpy as jnp
from jax import lax
from jax.experimental import pallas as pl
from jax.experimental.pallas import tpu as pltpu


def _groupnorm_kernel(x_ref, a_ref, w_ref, b_ref, o_ref, *, eps):
    """One block: x_ref (R, HW); each group is Cg consecutive rows."""
    x = x_ref[...].astype(jnp.float32)                    # (R, HW)

    # Single sweep over the tile: per-row sum and sum of squares (lane/XLU
    # reductions, f32 accumulation).
    row_sum = jnp.sum(x, axis=-1, keepdims=True)          # (R, 1)
    row_sumsq = jnp.sum(x * x, axis=-1, keepdims=True)    # (R, 1)

    # Fold rows of the same group: a_ref is block-diagonal with 1/(Cg*HW)
    # inside each group's Cg x Cg block, so the matmul yields the group mean
    # and E[x^2] already replicated on every row of the group.
    a = a_ref[...]                                        # (R, R) f32
    mean = jnp.dot(a, row_sum, preferred_element_type=jnp.float32)   # (R, 1)
    ex2 = jnp.dot(a, row_sumsq, preferred_element_type=jnp.float32)  # (R, 1)
    var = jnp.maximum(ex2 - mean * mean, 0.0)             # biased var (matches torch)
    inv = lax.rsqrt(var + eps)                            # (R, 1)

    # Fused affine: y = x * scale + shift  (2 VPU ops per element).
    w = w_ref[...]                                        # (R, 1)
    b = b_ref[...]                                        # (R, 1)
    scale = inv * w
    shift = b - mean * scale
    o_ref[...] = (x * scale + shift).astype(o_ref.dtype)


def _choose_samples_per_block(n, c, hw, itemsize, *, target_bytes=2 << 20,
                              max_rows=512):
    """Pick k = whole samples per block (block rows = k*C, sample aligned).

    ~2 MiB blocks keep double-buffered input+output well under the default
    scoped VMEM on v5e/v6e/v7x while amortizing the ~0.35 us per-step cost.
    """
    per_sample = c * hw * itemsize
    # Valid k: divides N and satisfies the TPU (8, 128) block-shape rule
    # (rows divisible by 8, or the block covers the full array).
    cands = [k for k in range(1, n + 1)
             if n % k == 0 and ((k * c) % 8 == 0 or k == n)]
    fitting = [k for k in cands
               if k * per_sample <= target_bytes and k * c <= max_rows]
    if not fitting:
        fitting = [k for k in cands if k * per_sample <= target_bytes] or [min(cands)]
    k = max(fitting)
    # Prefer >= 2 grid steps (v7x megacore / pipelining) if that keeps blocks
    # sublane-dense and at least ~1 MiB (or half the total problem).
    if n // k == 1:
        floor_bytes = min(1 << 20, (n * per_sample) // 2)
        smaller = [d for d in fitting
                   if n // d >= 2 and (d * c) % 8 == 0
                   and d * per_sample >= floor_bytes]
        if smaller:
            k = max(smaller)
    return k


def group_norm(x, weight, bias, *, num_groups, eps):
    """GroupNorm forward. x: (N, C, H, W) NCHW, weight/bias: (C,)."""
    n, c, h, w = x.shape
    g = num_groups
    cg = c // g
    hw = h * w

    k = _choose_samples_per_block(n, c, hw, jnp.dtype(x.dtype).itemsize)
    rows = k * c                      # sublane rows per block (sample aligned)
    num_blocks = n // k

    # Lane-dense 2-D view: rows = channels, lanes = spatial extent.
    # TODO(synk): for H*W not a multiple of 128, pad the lane dim to avoid
    # masked partial stores (not needed here, HW = 256).
    x2 = x.reshape(n * c, hw)

    # Per-row affine parameters for one block (pattern repeats every sample).
    w_col = jnp.tile(weight.astype(jnp.float32), k).reshape(rows, 1)
    b_col = jnp.tile(bias.astype(jnp.float32), k).reshape(rows, 1)

    # Block-diagonal group-averaging matrix (1/(Cg*HW) within each group).
    gid = jnp.arange(rows, dtype=jnp.int32) // cg
    a_mat = (gid[:, None] == gid[None, :]).astype(jnp.float32) / float(cg * hw)

    kernel = functools.partial(_groupnorm_kernel, eps=eps)

    out = pl.pallas_call(
        kernel,
        out_shape=jax.ShapeDtypeStruct((n * c, hw), x.dtype),
        grid=(num_blocks,),
        in_specs=[
            pl.BlockSpec((rows, hw), lambda i: (i, 0)),    # x block (pipelined)
            pl.BlockSpec((rows, rows), lambda i: (0, 0)),  # A (fetched once, resident)
            pl.BlockSpec((rows, 1), lambda i: (0, 0)),     # per-row weight
            pl.BlockSpec((rows, 1), lambda i: (0, 0)),     # per-row bias
        ],
        out_specs=pl.BlockSpec((rows, hw), lambda i: (i, 0)),
        compiler_params=pltpu.CompilerParams(
            dimension_semantics=("parallel",),
        ),
    )(x2, a_mat, w_col, b_col)

    return out.reshape(n, c, h, w)


def group_norm_ref(x, weight, bias, *, num_groups, eps):
    """Pure-JAX reference matching torch.nn.GroupNorm semantics."""
    n, c, h, w = x.shape
    xg = x.reshape(n, num_groups, -1).astype(jnp.float32)
    mean = jnp.mean(xg, axis=-1, keepdims=True)
    var = jnp.mean(jnp.square(xg - mean), axis=-1, keepdims=True)
    xn = ((xg - mean) / jnp.sqrt(var + eps)).reshape(n, c, h, w)
    return (xn * weight[None, :, None, None] + bias[None, :, None, None]).astype(x.dtype)


if __name__ == "__main__":
    # Module config: num_features=4, num_groups=2, eps=1e-5
    num_features = 4
    num_groups = 2
    eps = 1e-5

    key = jax.random.PRNGKey(0)
    kx, kw, kb = jax.random.split(key, 3)

    x = jax.random.normal(kx, (2, num_features, 16, 16), dtype=jnp.float32)
    weight = jax.random.normal(kw, (num_features,), dtype=jnp.float32)
    bias = jax.random.normal(kb, (num_features,), dtype=jnp.float32)

    y = group_norm(x, weight, bias, num_groups=num_groups, eps=eps)
    y = jax.block_until_ready(y)

    y_ref = group_norm_ref(x, weight, bias, num_groups=num_groups, eps=eps)
    assert y.shape == x.shape and y.dtype == x.dtype
    assert jnp.allclose(y, y_ref, atol=1e-5, rtol=1e-5), "mismatch vs reference"

    print("KERNEL_OK")
</pallas_src>

<mosaic_0001>
module attributes {stable_mosaic.version = 11 : i64} {
  func.func @_groupnorm_kernel(%arg0: i32, %arg1: memref<8x256xf32, #tpu.memory_space<vmem>>, %arg2: memref<8x8xf32, #tpu.memory_space<vmem>>, %arg3: memref<8x1xf32, #tpu.memory_space<vmem>>, %arg4: memref<8x1xf32, #tpu.memory_space<vmem>>, %arg5: memref<8x256xf32, #tpu.memory_space<vmem>>) attributes {dimension_semantics = [#tpu.dimension_semantics<parallel>], iteration_bounds = array<i64: 1>, scalar_prefetch = 0 : i64, scratch_operands = 0 : i64, tpu.core_type = #tpu.core_type<tc>, window_params = [{transform_indices = @transform_0, window_bounds = array<i64: 8, 256>}, {pipeline_mode = #tpu.pipeline_mode<synchronous>, transform_indices = @transform_1, window_bounds = array<i64: 8, 8>}, {pipeline_mode = #tpu.pipeline_mode<synchronous>, transform_indices = @transform_2, window_bounds = array<i64: 8, 1>}, {pipeline_mode = #tpu.pipeline_mode<synchronous>, transform_indices = @transform_3, window_bounds = array<i64: 8, 1>}, {transform_indices = @transform_4, window_bounds = array<i64: 8, 256>}]} {
    %c0 = arith.constant 0 : index
    %c0_0 = arith.constant 0 : index
    %0 = vector.load %arg1[%c0, %c0_0] : memref<8x256xf32, #tpu.memory_space<vmem>>, vector<8x256xf32>
    %cst = arith.constant dense<0.000000e+00> : vector<8xf32>
    %1 = vector.multi_reduction <add>, %0, %cst [1] : vector<8x256xf32> to vector<8xf32>
    %2 = vector.shape_cast %1 : vector<8xf32> to vector<8x1xf32>
    %3 = arith.mulf %0, %0 : vector<8x256xf32>
    %cst_1 = arith.constant dense<0.000000e+00> : vector<8xf32>
    %4 = vector.multi_reduction <add>, %3, %cst_1 [1] : vector<8x256xf32> to vector<8xf32>
    %5 = vector.shape_cast %4 : vector<8xf32> to vector<8x1xf32>
    %c0_2 = arith.constant 0 : index
    %c0_3 = arith.constant 0 : index
    %6 = vector.load %arg2[%c0_2, %c0_3] : memref<8x8xf32, #tpu.memory_space<vmem>>, vector<8x8xf32>
    %cst_4 = arith.constant dense<0.000000e+00> : vector<8x1xf32>
    %7 = tpu.matmul %6, %2, %cst_4 {dimension_numbers = #tpu.dot_dimension_numbers<[1], [0], [0], [1], [0, 0, 1, 1], [], []>} : vector<8x8xf32>, vector<8x1xf32>, vector<8x1xf32> -> vector<8x1xf32>
    %cst_5 = arith.constant dense<0.000000e+00> : vector<8x1xf32>
    %8 = tpu.matmul %6, %5, %cst_5 {dimension_numbers = #tpu.dot_dimension_numbers<[1], [0], [0], [1], [0, 0, 1, 1], [], []>} : vector<8x8xf32>, vector<8x1xf32>, vector<8x1xf32> -> vector<8x1xf32>
    %9 = arith.mulf %7, %7 : vector<8x1xf32>
    %10 = arith.subf %8, %9 : vector<8x1xf32>
    %cst_6 = arith.constant 0.000000e+00 : f32
    %11 = vector.broadcast %cst_6 : f32 to vector<8x1xf32>
    %12 = arith.maximumf %10, %11 : vector<8x1xf32>
    %cst_7 = arith.constant 9.99999974E-6 : f32
    %13 = vector.broadcast %cst_7 : f32 to vector<8x1xf32>
    %14 = arith.addf %12, %13 : vector<8x1xf32>
    %15 = math.rsqrt %14 : vector<8x1xf32>
    %c0_8 = arith.constant 0 : index
    %c0_9 = arith.constant 0 : index
    %16 = vector.load %arg3[%c0_8, %c0_9] : memref<8x1xf32, #tpu.memory_space<vmem>>, vector<8x1xf32>
    %c0_10 = arith.constant 0 : index
    %c0_11 = arith.constant 0 : index
    %17 = vector.load %arg4[%c0_10, %c0_11] : memref<8x1xf32, #tpu.memory_space<vmem>>, vector<8x1xf32>
    %18 = arith.mulf %15, %16 : vector<8x1xf32>
    %19 = arith.mulf %7, %18 : vector<8x1xf32>
    %20 = arith.subf %17, %19 : vector<8x1xf32>
    %21 = vector.broadcast %18 : vector<8x1xf32> to vector<8x256xf32>
    %22 = arith.mulf %0, %21 : vector<8x256xf32>
    %23 = vector.broadcast %20 : vector<8x1xf32> to vector<8x256xf32>
    %24 = arith.addf %22, %23 : vector<8x256xf32>
    %c0_12 = arith.constant 0 : index
    %c0_13 = arith.constant 0 : index
    %25 = vector.load %arg5[%c0_12, %c0_13] : memref<8x256xf32, #tpu.memory_space<vmem>>, vector<8x256xf32>
    tpu.vector_store %arg5[%c0_12, %c0_13], %24 {strides = array<i32>} : memref<8x256xf32, #tpu.memory_space<vmem>>, vector<8x256xf32>,
    return
  }
  func.func @transform_0(%arg0: i32) -> (i32, i32) {
    %c0_i32 = arith.constant 0 : i32
    %c0_i32_0 = arith.constant 0 : i32
    return %arg0, %c0_i32 : i32, i32
  }
  func.func @transform_1(%arg0: i32) -> (i32, i32) {
    %c0_i32 = arith.constant 0 : i32
    %c0_i32_0 = arith.constant 0 : i32
    %c0_i32_1 = arith.constant 0 : i32
    return %c0_i32, %c0_i32_0 : i32, i32
  }
  func.func @transform_2(%arg0: i32) -> (i32, i32) {
    %c0_i32 = arith.constant 0 : i32
    %c0_i32_0 = arith.constant 0 : i32
    %c0_i32_1 = arith.constant 0 : i32
    return %c0_i32, %c0_i32_0 : i32, i32
  }
  func.func @transform_3(%arg0: i32) -> (i32, i32) {
    %c0_i32 = arith.constant 0 : i32
    %c0_i32_0 = arith.constant 0 : i32
    %c0_i32_1 = arith.constant 0 : i32
    return %c0_i32, %c0_i32_0 : i32, i32
  }
  func.func @transform_4(%arg0: i32) -> (i32, i32) {
    %c0_i32 = arith.constant 0 : i32
    %c0_i32_0 = arith.constant 0 : i32
    return %arg0, %c0_i32 : i32, i32
  }
}

</mosaic_0001>

<bundles_post_ra>
// kernel: tpu_custom_call.1
= control target key start
LH: loop header
LB: loop body
LE: loop exit
PB: predicated region body
PF: predicated region fallthrough
CT: control target
= control target key end

     0   :  { %9 = vsyncpa [#allocation3], 0  ;;  %s343_s0 = inlined_call_operand.vmem [shape: f32[8,256], index: 0, kind: input, shape index: {}]   ;;  %s344_s1 = inlined_call_operand.hbm [shape: f32[8,8], index: 1, kind: input, shape index: {}]   ;;  %s345_s2 = inlined_call_operand.vmem [shape: f32[8,1], index: 2, kind: input, shape index: {}]   ;;  %s346_s3 = inlined_call_operand.vmem [shape: f32[8,1], index: 3, kind: input, shape index: {}]   ;;  %s347_s4 = inlined_call_operand.hbm [shape: f32[8,256], index: 4, kind: output, shape index: {}]  }
   0x1   :  { %10 = vsyncpa [#allocation4], 0  ;;  %s295_s15 = smov [#allocation2]  }
   0x2   :  { %s19_s16 = sshll.u32 %s295_s15, 4  ;;  %s20_s16 = int_to_ptr.vmem [resolvable:$true] %s19_s16 }
   0x3   :  { %s259_s17 = scalar_lea.vmem %s20_s16, 128  ;;  %p264_p1 = scmp.lt.s32.totalorder %s20_s16, %s20_s16 }
   0x4   :  { %p260_p0 = scmp.ne.s32.totalorder %s20_s16, %s259_s17  ;;  %p265_p2 = scmp.lt.s32.totalorder %s259_s17, %s259_s17 }
   0x6   :  { %p266_p3 = por %p265_p2, %p264_p1 }
   0x8   :  { %p267_p4 = pnand %p266_p3, %p260_p0 }
   0xa   :  { %270 = shalt.err (!%p267_p4)
}
   0xb   :  { %22 = dma.hbm_to_vmem [thread:$0]  %s344_s1, 128, %s20_s16, [#allocation3]  }
   0xc   :  { %291 = dma.done.wait [#allocation3], 128  }
   0xd   :  { %292 = vsyncadd [#allocation3], 4294967168  ;;  %v296_v0 = vmov 0.0   ;;  %v30_v1 = vld [vmem:[%s343_s0] sm:$0xff]  ;;  %v31_v2 = vld [vmem:[%s343_s0 + $0x8] sm:$0xff]  ;;  %vm297_vm0 = vmmov 0  }
   0xe   :  { %232 = vmatprep.subr.mxu0 %v296_v0  ;;  %237 = vmatprep.subr.mxu1 %v296_v0  ;;  %v32_v3 = vadd.f32 %v31_v2, %v30_v1  ;;  %v35_v4 = vmul.f32 %v30_v1, %v30_v1  ;;  %v36_v5 = vmul.f32 %v31_v2, %v31_v2  ;;  %v40_v7 = vld [vmem:[#allocation2] sm:$0xff]  ;;  %vm41_vm1 = vcmask 64512   ;;  %s299_s26 = smov [#allocation5]  }
   0xf   :  { %234 = vmatprep.mubr.msk.f32.mxu0 %vm297_vm0, %v296_v0  ;;  %239 = vmatprep.mubr.msk.f32.mxu1 %vm297_vm0, %v296_v0  ;;  %v298_v10 = vmov 0   ;;  %v190_v19 = vld [vmem:[%s345_s2] sm:$0xff]  ;;  %s217_s27 = sshll.u32 %s299_s26, 4  ;;  %s218_s27 = int_to_ptr.vmem [resolvable:$true] %s217_s27 }
  0x10   :  { %33 = vadd.xlane.f32.xlu0 %v32_v3  ;;  %v37_v6 = vadd.f32 %v36_v5, %v35_v4  ;;  %247 = vset.pattern.permute.xlu1 %v298_v10  ;;  %v191_v22 = vld [vmem:[%s346_s3] sm:$0xff]  ;;  %s271_s2 = scalar_lea.vmem %s218_s27, 256  ;;  %p276_p6 = scmp.lt.s32.totalorder %s218_s27, %s218_s27 }
  0x11   :  { %248 = vset.pattern.permute.xlu0 %v298_v10  ;;  %p272_p5 = scmp.ne.s32.totalorder %s218_s27, %s271_s2  ;;  %p277_p7 = scmp.lt.s32.totalorder %s271_s2, %s271_s2 }
  0x13   :  { %p278_p8 = por %p277_p7, %p276_p6 }
  0x14   :  { %38 = vadd.xlane.f32.xlu0 %v37_v6 }
  0x15   :  { %p279_p9 = pnand %p278_p8, %p272_p5 }
  0x99   :  { %v34_v8 = vpop.xlane.xlu0 %33 }
  0x9a   :  { %233 = vmatpush3.msra.mxu0 %v34_v8 }
  0x9b   :  { %235 = vmatmul.mubr.msk.f32.vlgmr.msra.gmra.mxu0 %vm41_vm1, %v40_v7 }
  0x9d   :  { %v39_v9 = vpop.xlane.xlu0 %38 }
  0x9e   :  { %238 = vmatpush3.msra.mxu1 %v39_v9 }
  0x9f   :  { %240 = vmatmul.mubr.msk.f32.vlgmr.msra.gmra.mxu1 %vm41_vm1, %v40_v7 }
 0x15b   :  { %v111_v11 = vpop.f32.mrf.mxu0 }
 0x15c   :  { %v185_v12 = vmul.f32 %v111_v11, %v111_v11 }
 0x15d   :  { %v236_v13 = vpop.f32.mrf.mxu0 }
 0x15f   :  { %v181_v14 = vpop.f32.mrf.mxu1 }
 0x160   :  { %v186_v15 = vsub.f32 %v181_v14, %v185_v12 }
 0x161   :  { %v241_v16 = vpop.f32.mrf.mxu1 }
 0x162   :  { %v187_v17 = vmax.f32 %v186_v15, 0.0 }
 0x164   :  { %v188_v18 = vadd.f32 1e-05, %v187_v17 }
 0x166   :  { %249 = vrsqrt.f32 %v188_v18 }
 0x173   :  { %v250_v20 = vpop.eup %249 }
 0x174   :  { %v192_v21 = vmul.f32 %v250_v20, %v190_v19 }
 0x176   :  { %197 = vperm.xlu1 %247, %v192_v21   ;;  %v193_v23 = vmul.f32 %v192_v21, %v111_v11 }
 0x178   :  { %v194_v24 = vsub.f32 %v191_v22, %v193_v23 }
 0x17a   :  { %204 = vperm.xlu1 %247, %v194_v24  }
 0x1f1   :  { %v198_v25 = vpop.permute.xlu1 %197 }
 0x1f2   :  { %v200_v26 = vmul.f32 %v198_v25, %v30_v1  ;;  %v201_v27 = vmul.f32 %v198_v25, %v31_v2 }
 0x1f5   :  { %v205_v28 = vpop.permute.xlu1 %204 }
 0x1f6   :  { %v207_v29 = vadd.f32 %v205_v28, %v200_v26  ;;  %v208_v30 = vadd.f32 %v205_v28, %v201_v27 }
 0x1f8   :  { %209 = vst [vmem:[#allocation5] sm:$0xff] %v207_v29  ;;  %210 = vst [vmem:[#allocation5 + $0x8] sm:$0xff] %v208_v30 }
 0x1f9   :  { %282 = shalt.err (!%p279_p9)
}
 0x1fa   :  { %220 = dma.vmem_to_hbm [thread:$0]  %s218_s27, 256, %s347_s4, [#allocation4]  }
 0x1fb   :  { %293 = dma.done.wait [#allocation4], 256  }
 0x1fc   :  { %294 = vsyncadd [#allocation4], 4294967040 }
 0x1fd   :  { %224 = vsyncpa [#allocation3], 1 }
 0x1fe   :  { %225 = vsyncpa [#allocation4], 1 }

</bundles_post_ra>
